<compile_context>
chip_gen: v5e
topology: v5e:2x2
jax: 0.10.0
libtpu: 0.0.40
codegen_flags: <defaults>
</compile_context>

<pallas_src>
import functools

import jax
import jax.numpy as jnp
from jax.experimental import pallas as pl
from jax.experimental.pallas import tpu as pltpu


def _round_up(x: int, m: int) -> int:
    return ((x + m - 1) // m) * m


def _vmem_capacity_bytes() -> int:
    try:
        return int(pltpu.get_tpu_info().vmem_capacity_bytes)
    except Exception:
        return 64 << 20   # conservative fallback: v7x per-TensorCore VMEM


# Try single-buffered resident weights first; flip to False (default double-buffering)
# if this JAX build's TPU lowering rejects pipeline_mode=pl.Buffered(1).
_SINGLE_BUFFER_WEIGHTS = [True]


# ---------------------------------------------------------------------------
# Kernel:
#   h = relu(x_s @ W1s[h] + x_u @ W1u[h] + b1[h])
#   h = relu(h @ W2 + b2)
#   out = h @ [Wmu | Wvar] + [bmu | bvar]        (lane-dense, split outside)
# ---------------------------------------------------------------------------
def multi_encoder_kernel(head_ref,                      # scalar prefetch (index_maps only)
                         xs_ref, xu_ref,
                         w1s_ref, w1u_ref, b1_ref,
                         w2_ref, b2_ref,
                         wo_ref, bo_ref,
                         out_ref):
    del head_ref
    cdt = w2_ref.dtype   # MXU operand dtype for the big matmuls (bf16 or f32)

    # layer1 (per-head MultiInputLayer), head already selected by the index_maps
    h = (jnp.dot(xs_ref[...], w1s_ref[...], preferred_element_type=jnp.float32)
         + jnp.dot(xu_ref[...], w1u_ref[...], preferred_element_type=jnp.float32)
         + b1_ref[...])
    h = jnp.maximum(h, 0.0)

    # layer2 + ReLU (f32 accumulation, f32 bias/ReLU epilogue)
    h = jnp.dot(h.astype(cdt), w2_ref[...], preferred_element_type=jnp.float32) + b2_ref[...]
    h = jnp.maximum(h, 0.0)

    # fused mu/var heads: one lane-dense matmul + unmasked full-width store
    out_ref[...] = (jnp.dot(h.astype(cdt), wo_ref[...], preferred_element_type=jnp.float32)
                    + bo_ref[...])


# ---------------------------------------------------------------------------
# One-time parameter packing (call once, reuse the result across forward calls)
# ---------------------------------------------------------------------------
def prepare_params(params, shared_dim, *, compute_dtype=jnp.bfloat16):
    """Pad / pack raw parameters ONCE; reuse the returned dict for every forward."""
    n_head, in_dim, hidden = params["w1"].shape
    unique_dim = in_dim - shared_dim
    z_dim = params["wmu"].shape[1]
    out_dim = 2 * z_dim
    h_pad = _round_up(hidden, 128)
    out_pad = _round_up(out_dim, 128)
    cdt = jnp.dtype(compute_dtype)

    w1 = params["w1"].astype(jnp.float32)
    # Layer-1 operands stay f32 (K dims are tiny/unaligned; negligible cost).
    w1s = (jnp.zeros((n_head, shared_dim, h_pad), jnp.float32)
           .at[:, :, :hidden].set(w1[:, :shared_dim, :]))
    w1u = (jnp.zeros((n_head, unique_dim, h_pad), jnp.float32)
           .at[:, :, :hidden].set(w1[:, shared_dim:, :]))
    b1 = jnp.zeros((n_head, 1, h_pad), jnp.float32).at[:, 0, :hidden].set(params["b1"])

    w2 = (jnp.zeros((h_pad, h_pad), jnp.float32)
          .at[:hidden, :hidden].set(params["w2"]).astype(cdt))
    b2 = jnp.zeros((1, h_pad), jnp.float32).at[0, :hidden].set(params["b2"])

    wo = jnp.concatenate([params["wmu"], params["wvar"]], axis=1)   # [hidden, 2*z_dim]
    bo = jnp.concatenate([params["bmu"], params["bvar"]], axis=0)   # [2*z_dim]
    wo_p = (jnp.zeros((h_pad, out_pad), jnp.float32)
            .at[:hidden, :out_dim].set(wo).astype(cdt))
    bo_p = jnp.zeros((1, out_pad), jnp.float32).at[0, :out_dim].set(bo)

    packed = dict(w1s=w1s, w1u=w1u, b1=b1, w2=w2, b2=b2, wo=wo_p, bo=bo_p)
    meta = dict(shared_dim=shared_dim, unique_dim=unique_dim, hidden=hidden,
                z_dim=z_dim, out_dim=out_dim, h_pad=h_pad, out_pad=out_pad,
                compute_dtype=cdt)
    return dict(packed=packed, meta=meta)


# ---------------------------------------------------------------------------
# pallas_call builder (cached per static config so repeated calls reuse it)
# ---------------------------------------------------------------------------
@functools.lru_cache(maxsize=None)
def _build_call(sd, ud, h_pad, out_pad, tb, n_steps,
                single_buffer_weights, vmem_limit, flops, bytes_accessed):
    b_pad = tb * n_steps
    wkw = {"pipeline_mode": pl.Buffered(1)} if single_buffer_weights else {}

    in_specs = [
        pl.BlockSpec((tb, sd), lambda i, hid: (i, 0)),                                   # x_shared tile
        pl.BlockSpec((tb, ud), lambda i, hid: (i, 0)),                                   # x_unique tile
        pl.BlockSpec((pl.Squeezed(), sd, h_pad), lambda i, hid: (hid[0], 0, 0), **wkw),  # W1s[head]
        pl.BlockSpec((pl.Squeezed(), ud, h_pad), lambda i, hid: (hid[0], 0, 0), **wkw),  # W1u[head]
        pl.BlockSpec((pl.Squeezed(), 1, h_pad), lambda i, hid: (hid[0], 0, 0), **wkw),   # b1[head]
        pl.BlockSpec((h_pad, h_pad), lambda i, hid: (0, 0), **wkw),                      # W2 (resident)
        pl.BlockSpec((1, h_pad), lambda i, hid: (0, 0), **wkw),                          # b2
        pl.BlockSpec((h_pad, out_pad), lambda i, hid: (0, 0), **wkw),                    # [Wmu | Wvar]
        pl.BlockSpec((1, out_pad), lambda i, hid: (0, 0), **wkw),                        # [bmu | bvar]
    ]
    out_spec = pl.BlockSpec((tb, out_pad), lambda i, hid: (i, 0))

    return pl.pallas_call(
        multi_encoder_kernel,
        out_shape=jax.ShapeDtypeStruct((b_pad, out_pad), jnp.float32),
        grid_spec=pltpu.PrefetchScalarGridSpec(
            num_scalar_prefetch=1,
            grid=(n_steps,),
            in_specs=in_specs,
            out_specs=out_spec,
        ),
        compiler_params=pltpu.CompilerParams(
            dimension_semantics=("parallel",),
            vmem_limit_bytes=int(vmem_limit),
        ),
        cost_estimate=pl.CostEstimate(flops=int(flops), transcendentals=0,
                                      bytes_accessed=int(bytes_accessed)),
    )


# ---------------------------------------------------------------------------
# Forward wrapper
# ---------------------------------------------------------------------------
def multi_encoder_forward(x_shared, x_unique, head_id, prepared, *, tile_b=None):
    """Returns (z_mu, z_var), each [B, z_dim] float32."""
    packed, meta = prepared["packed"], prepared["meta"]
    sd, ud = meta["shared_dim"], meta["unique_dim"]
    h_pad, out_pad = meta["h_pad"], meta["out_pad"]
    z_dim, out_dim = meta["z_dim"], meta["out_dim"]
    wbpe = meta["compute_dtype"].itemsize        # element size of W2 / Wo

    assert x_shared.shape[-1] == sd and x_unique.shape[-1] == ud
    assert x_shared.shape[0] == x_unique.shape[0]
    B = x_shared.shape[0]

    vmem_cap = _vmem_capacity_bytes()
    vmem_budget = int(0.75 * vmem_cap)           # headroom for Mosaic internal scratch
    if tile_b is None:
        # larger batch tiles where VMEM is 128 MiB (v5e/v6e); smaller on v7x (64 MiB)
        tile_b = 1024 if vmem_cap >= (100 << 20) else 512

    # resident weight bytes (ONE head of W1; W2/Wo in compute dtype; biases f32)
    w_bytes = ((sd + ud) * h_pad * 4
               + (h_pad * h_pad + h_pad * out_pad) * wbpe
               + (2 * h_pad + out_pad) * 4)
    flops_per_row = 2 * ((sd + ud) * h_pad + h_pad * h_pad + h_pad * out_pad)

    def _run(single_buffer_weights: bool):
        weight_bufs = 1 if single_buffer_weights else 2

        def vmem_need(tb_):
            return (weight_bufs * w_bytes
                    + 2 * tb_ * (sd + ud) * 4      # double-buffered x tiles (f32)
                    + 2 * tb_ * out_pad * 4        # double-buffered out tiles (f32)
                    + (2 << 20))                   # margin

        # >=2 grid steps whenever the batch allows: shards the "parallel" axis across
        # v7x's two TensorCores and gives the x/out pipeline something to overlap.
        tb = max(8, min(_round_up(tile_b, 8), _round_up(pl.cdiv(B, 2), 8)))
        # Shrink the batch tile (never the weights) until we fit the VMEM budget.
        while vmem_need(tb) > vmem_budget and tb > 8:
            tb = max(8, _round_up(tb // 2, 8))

        b_pad = _round_up(max(B, tb), tb)
        n_steps = b_pad // tb

        xs = x_shared.astype(jnp.float32)
        xu = x_unique.astype(jnp.float32)
        if b_pad != B:   # pad batch rows only; feature dims stay exactly as given
            xs = jnp.zeros((b_pad, sd), jnp.float32).at[:B].set(xs)
            xu = jnp.zeros((b_pad, ud), jnp.float32).at[:B].set(xu)

        flops = b_pad * flops_per_row
        bytes_accessed = b_pad * (sd + ud) * 4 + b_pad * out_pad * 4 + w_bytes
        vmem_limit = min(max(vmem_need(tb), 4 << 20), vmem_budget)

        call = _build_call(sd, ud, h_pad, out_pad, tb, n_steps,
                           single_buffer_weights, vmem_limit, flops, bytes_accessed)
        head_arr = jnp.asarray(head_id, dtype=jnp.int32).reshape((1,))
        return call(head_arr, xs, xu,
                    packed["w1s"], packed["w1u"], packed["b1"],
                    packed["w2"], packed["b2"], packed["wo"], packed["bo"])

    if _SINGLE_BUFFER_WEIGHTS[0]:
        try:
            out = _run(True)
        except Exception:
            _SINGLE_BUFFER_WEIGHTS[0] = False     # this build rejects Buffered(1); fall back
            out = _run(False)
    else:
        out = _run(False)

    z = out[:B]
    return z[:, :z_dim], z[:, z_dim:out_dim]


# ---------------------------------------------------------------------------
# Deterministic synthetic parameters (weights stored [in, out], PyTorch-style init)
# ---------------------------------------------------------------------------
def init_params(key, n_head, shared_dim, unique_dim, hidden_dim, z_dim):
    in_dim = shared_dim + unique_dim
    ks = jax.random.split(key, 4)

    def lin(k, fan_in, fan_out, leading=()):
        bound = 1.0 / (fan_in ** 0.5)
        kw, kb = jax.random.split(k)
        w = jax.random.uniform(kw, leading + (fan_in, fan_out), jnp.float32, -bound, bound)
        b = jax.random.uniform(kb, leading + (fan_out,), jnp.float32, -bound, bound)
        return w, b

    w1, b1 = lin(ks[0], in_dim, hidden_dim, leading=(n_head,))
    w2, b2 = lin(ks[1], hidden_dim, hidden_dim)
    wmu, bmu = lin(ks[2], hidden_dim, z_dim)
    wvar, bvar = lin(ks[3], hidden_dim, z_dim)
    return dict(w1=w1, b1=b1, w2=w2, b2=b2, wmu=wmu, bmu=bmu, wvar=wvar, bvar=bvar)


if __name__ == "__main__":
    n_head, shared_dim, unique_dim, hidden_dim, z_dim = 3, 16, 8, 32, 2
    batch, head_id = 8, 1

    key = jax.random.PRNGKey(0)
    kxs, kxu, kp = jax.random.split(key, 3)
    x_shared = jax.random.normal(kxs, (batch, shared_dim), dtype=jnp.float32)
    x_unique = jax.random.normal(kxu, (batch, unique_dim), dtype=jnp.float32)
    params = init_params(kp, n_head, shared_dim, unique_dim, hidden_dim, z_dim)

    # Pure-JAX reference (same assumed MultiInputLayer semantics)
    def ref(x_s, x_u, h_id, p):
        x = jnp.concatenate([x_s, x_u], axis=-1)
        h = jnp.maximum(x @ p["w1"][h_id] + p["b1"][h_id], 0.0)
        h = jnp.maximum(h @ p["w2"] + p["b2"], 0.0)
        return h @ p["wmu"] + p["bmu"], h @ p["wvar"] + p["bvar"]

    mu_ref, var_ref = ref(x_shared, x_unique, head_id, params)

    # f32-operand path: tight check against the f32 reference.
    prepared_f32 = prepare_params(params, shared_dim, compute_dtype=jnp.float32)
    z_mu, z_var = multi_encoder_forward(x_shared, x_unique, head_id, prepared_f32)
    jax.block_until_ready((z_mu, z_var))
    assert z_mu.shape == (batch, z_dim) and z_var.shape == (batch, z_dim)
    assert jnp.allclose(z_mu, mu_ref, atol=1e-4, rtol=1e-4)
    assert jnp.allclose(z_var, var_ref, atol=1e-4, rtol=1e-4)

    # Default bf16-operand path (f32 accumulation): expected precision loss vs. the
    # f32 reference, so the tolerance is loosened accordingly.
    prepared_bf16 = prepare_params(params, shared_dim)        # compute_dtype=bf16
    z_mu16, z_var16 = multi_encoder_forward(x_shared, x_unique, head_id, prepared_bf16)
    jax.block_until_ready((z_mu16, z_var16))
    assert z_mu16.shape == (batch, z_dim) and z_var16.shape == (batch, z_dim)
    assert jnp.allclose(z_mu16, mu_ref, atol=5e-2, rtol=5e-2)
    assert jnp.allclose(z_var16, var_ref, atol=5e-2, rtol=5e-2)

    print("KERNEL_OK")
</pallas_src>

<mosaic_0001>
module attributes {stable_mosaic.version = 11 : i64} {
  func.func @multi_encoder_kernel(%arg0: i32, %arg1: memref<1xi32, #tpu.memory_space<smem>>, %arg2: memref<8x16xf32, #tpu.memory_space<vmem>>, %arg3: memref<8x8xf32, #tpu.memory_space<vmem>>, %arg4: memref<1x16x128xf32, #tpu.memory_space<vmem>>, %arg5: memref<1x8x128xf32, #tpu.memory_space<vmem>>, %arg6: memref<1x1x128xf32, #tpu.memory_space<vmem>>, %arg7: memref<128x128xf32, #tpu.memory_space<vmem>>, %arg8: memref<1x128xf32, #tpu.memory_space<vmem>>, %arg9: memref<128x128xf32, #tpu.memory_space<vmem>>, %arg10: memref<1x128xf32, #tpu.memory_space<vmem>>, %arg11: memref<8x128xf32, #tpu.memory_space<vmem>>) attributes {dimension_semantics = [#tpu.dimension_semantics<parallel>], iteration_bounds = array<i64: 1>, scalar_prefetch = 1 : i64, scratch_operands = 0 : i64, tpu.core_type = #tpu.core_type<tc>, window_params = [{transform_indices = @transform_0, window_bounds = array<i64: 8, 16>}, {transform_indices = @transform_1, window_bounds = array<i64: 8, 8>}, {pipeline_mode = #tpu.pipeline_mode<synchronous>, transform_indices = @transform_2, window_bounds = array<i64: 1, 16, 128>}, {pipeline_mode = #tpu.pipeline_mode<synchronous>, transform_indices = @transform_3, window_bounds = array<i64: 1, 8, 128>}, {pipeline_mode = #tpu.pipeline_mode<synchronous>, transform_indices = @transform_4, window_bounds = array<i64: 1, 1, 128>}, {pipeline_mode = #tpu.pipeline_mode<synchronous>, transform_indices = @transform_5, window_bounds = array<i64: 128, 128>}, {pipeline_mode = #tpu.pipeline_mode<synchronous>, transform_indices = @transform_6, window_bounds = array<i64: 1, 128>}, {pipeline_mode = #tpu.pipeline_mode<synchronous>, transform_indices = @transform_7, window_bounds = array<i64: 128, 128>}, {pipeline_mode = #tpu.pipeline_mode<synchronous>, transform_indices = @transform_8, window_bounds = array<i64: 1, 128>}, {transform_indices = @transform_9, window_bounds = array<i64: 8, 128>}]} {
    %c0 = arith.constant 0 : index
    %c0_0 = arith.constant 0 : index
    %0 = vector.load %arg2[%c0, %c0_0] : memref<8x16xf32, #tpu.memory_space<vmem>>, vector<8x16xf32>
    %c0_1 = arith.constant 0 : index
    %c0_2 = arith.constant 0 : index
    %c0_3 = arith.constant 0 : index
    %1 = vector.load %arg4[%c0_1, %c0_2, %c0_3] : memref<1x16x128xf32, #tpu.memory_space<vmem>>, vector<1x16x128xf32>
    %2 = vector.shape_cast %1 : vector<1x16x128xf32> to vector<16x128xf32>
    %cst = arith.constant dense<0.000000e+00> : vector<8x128xf32>
    %3 = tpu.matmul %0, %2, %cst {dimension_numbers = #tpu.dot_dimension_numbers<[1], [0], [0], [1], [0, 0, 1, 1], [], []>} : vector<8x16xf32>, vector<16x128xf32>, vector<8x128xf32> -> vector<8x128xf32>
    %c0_4 = arith.constant 0 : index
    %c0_5 = arith.constant 0 : index
    %4 = vector.load %arg3[%c0_4, %c0_5] : memref<8x8xf32, #tpu.memory_space<vmem>>, vector<8x8xf32>
    %c0_6 = arith.constant 0 : index
    %c0_7 = arith.constant 0 : index
    %c0_8 = arith.constant 0 : index
    %5 = vector.load %arg5[%c0_6, %c0_7, %c0_8] : memref<1x8x128xf32, #tpu.memory_space<vmem>>, vector<1x8x128xf32>
    %6 = vector.shape_cast %5 : vector<1x8x128xf32> to vector<8x128xf32>
    %cst_9 = arith.constant dense<0.000000e+00> : vector<8x128xf32>
    %7 = tpu.matmul %4, %6, %cst_9 {dimension_numbers = #tpu.dot_dimension_numbers<[1], [0], [0], [1], [0, 0, 1, 1], [], []>} : vector<8x8xf32>, vector<8x128xf32>, vector<8x128xf32> -> vector<8x128xf32>
    %8 = arith.addf %3, %7 : vector<8x128xf32>
    %c0_10 = arith.constant 0 : index
    %c0_11 = arith.constant 0 : index
    %c0_12 = arith.constant 0 : index
    %9 = vector.load %arg6[%c0_10, %c0_11, %c0_12] : memref<1x1x128xf32, #tpu.memory_space<vmem>>, vector<1x1x128xf32>
    %10 = vector.shape_cast %9 : vector<1x1x128xf32> to vector<1x128xf32>
    %11 = vector.broadcast %10 : vector<1x128xf32> to vector<8x128xf32>
    %12 = arith.addf %8, %11 : vector<8x128xf32>
    %cst_13 = arith.constant 0.000000e+00 : f32
    %13 = vector.broadcast %cst_13 : f32 to vector<8x128xf32>
    %14 = arith.maximumf %12, %13 : vector<8x128xf32>
    %c0_14 = arith.constant 0 : index
    %c0_15 = arith.constant 0 : index
    %15 = vector.load %arg7[%c0_14, %c0_15] : memref<128x128xf32, #tpu.memory_space<vmem>>, vector<128x128xf32>
    %cst_16 = arith.constant dense<0.000000e+00> : vector<8x128xf32>
    %16 = tpu.matmul %14, %15, %cst_16 {dimension_numbers = #tpu.dot_dimension_numbers<[1], [0], [0], [1], [0, 0, 1, 1], [], []>} : vector<8x128xf32>, vector<128x128xf32>, vector<8x128xf32> -> vector<8x128xf32>
    %c0_17 = arith.constant 0 : index
    %c0_18 = arith.constant 0 : index
    %17 = vector.load %arg8[%c0_17, %c0_18] : memref<1x128xf32, #tpu.memory_space<vmem>>, vector<1x128xf32>
    %18 = vector.broadcast %17 : vector<1x128xf32> to vector<8x128xf32>
    %19 = arith.addf %16, %18 : vector<8x128xf32>
    %cst_19 = arith.constant 0.000000e+00 : f32
    %20 = vector.broadcast %cst_19 : f32 to vector<8x128xf32>
    %21 = arith.maximumf %19, %20 : vector<8x128xf32>
    %c0_20 = arith.constant 0 : index
    %c0_21 = arith.constant 0 : index
    %22 = vector.load %arg9[%c0_20, %c0_21] : memref<128x128xf32, #tpu.memory_space<vmem>>, vector<128x128xf32>
    %cst_22 = arith.constant dense<0.000000e+00> : vector<8x128xf32>
    %23 = tpu.matmul %21, %22, %cst_22 {dimension_numbers = #tpu.dot_dimension_numbers<[1], [0], [0], [1], [0, 0, 1, 1], [], []>} : vector<8x128xf32>, vector<128x128xf32>, vector<8x128xf32> -> vector<8x128xf32>
    %c0_23 = arith.constant 0 : index
    %c0_24 = arith.constant 0 : index
    %24 = vector.load %arg10[%c0_23, %c0_24] : memref<1x128xf32, #tpu.memory_space<vmem>>, vector<1x128xf32>
    %25 = vector.broadcast %24 : vector<1x128xf32> to vector<8x128xf32>
    %26 = arith.addf %23, %25 : vector<8x128xf32>
    %c0_25 = arith.constant 0 : index
    %c0_26 = arith.constant 0 : index
    %27 = vector.load %arg11[%c0_25, %c0_26] : memref<8x128xf32, #tpu.memory_space<vmem>>, vector<8x128xf32>
    tpu.vector_store %arg11[%c0_25, %c0_26], %26 {strides = array<i32>} : memref<8x128xf32, #tpu.memory_space<vmem>>, vector<8x128xf32>,
    return
  }
  func.func @transform_0(%arg0: i32, %arg1: memref<1xi32, #tpu.memory_space<smem>>) -> (i32, i32) {
    %c0_i32 = arith.constant 0 : i32
    %c0_i32_0 = arith.constant 0 : i32
    return %arg0, %c0_i32 : i32, i32
  }
  func.func @transform_1(%arg0: i32, %arg1: memref<1xi32, #tpu.memory_space<smem>>) -> (i32, i32) {
    %c0_i32 = arith.constant 0 : i32
    %c0_i32_0 = arith.constant 0 : i32
    return %arg0, %c0_i32 : i32, i32
  }
  func.func @transform_2(%arg0: i32, %arg1: memref<1xi32, #tpu.memory_space<smem>>) -> (i32, i32, i32) {
    %c0 = arith.constant 0 : index
    %0 = memref.load %arg1[%c0] : memref<1xi32, #tpu.memory_space<smem>>
    %c0_i32 = arith.constant 0 : i32
    %c0_i32_0 = arith.constant 0 : i32
    %c0_i32_1 = arith.constant 0 : i32
    return %0, %c0_i32, %c0_i32_0 : i32, i32, i32
  }
  func.func @transform_3(%arg0: i32, %arg1: memref<1xi32, #tpu.memory_space<smem>>) -> (i32, i32, i32) {
    %c0 = arith.constant 0 : index
    %0 = memref.load %arg1[%c0] : memref<1xi32, #tpu.memory_space<smem>>
    %c0_i32 = arith.constant 0 : i32
    %c0_i32_0 = arith.constant 0 : i32
    %c0_i32_1 = arith.constant 0 : i32
    return %0, %c0_i32, %c0_i32_0 : i32, i32, i32
  }
  func.func @transform_4(%arg0: i32, %arg1: memref<1xi32, #tpu.memory_space<smem>>) -> (i32, i32, i32) {
    %c0 = arith.constant 0 : index
    %0 = memref.load %arg1[%c0] : memref<1xi32, #tpu.memory_space<smem>>
    %c0_i32 = arith.constant 0 : i32
    %c0_i32_0 = arith.constant 0 : i32
    %c0_i32_1 = arith.constant 0 : i32
    return %0, %c0_i32, %c0_i32_0 : i32, i32, i32
  }
  func.func @transform_5(%arg0: i32, %arg1: memref<1xi32, #tpu.memory_space<smem>>) -> (i32, i32) {
    %c0_i32 = arith.constant 0 : i32
    %c0_i32_0 = arith.constant 0 : i32
    %c0_i32_1 = arith.constant 0 : i32
    return %c0_i32, %c0_i32_0 : i32, i32
  }
  func.func @transform_6(%arg0: i32, %arg1: memref<1xi32, #tpu.memory_space<smem>>) -> (i32, i32) {
    %c0_i32 = arith.constant 0 : i32
    %c0_i32_0 = arith.constant 0 : i32
    %c0_i32_1 = arith.constant 0 : i32
    return %c0_i32, %c0_i32_0 : i32, i32
  }
  func.func @transform_7(%arg0: i32, %arg1: memref<1xi32, #tpu.memory_space<smem>>) -> (i32, i32) {
    %c0_i32 = arith.constant 0 : i32
    %c0_i32_0 = arith.constant 0 : i32
    %c0_i32_1 = arith.constant 0 : i32
    return %c0_i32, %c0_i32_0 : i32, i32
  }
  func.func @transform_8(%arg0: i32, %arg1: memref<1xi32, #tpu.memory_space<smem>>) -> (i32, i32) {
    %c0_i32 = arith.constant 0 : i32
    %c0_i32_0 = arith.constant 0 : i32
    %c0_i32_1 = arith.constant 0 : i32
    return %c0_i32, %c0_i32_0 : i32, i32
  }
  func.func @transform_9(%arg0: i32, %arg1: memref<1xi32, #tpu.memory_space<smem>>) -> (i32, i32) {
    %c0_i32 = arith.constant 0 : i32
    %c0_i32_0 = arith.constant 0 : i32
    return %arg0, %c0_i32 : i32, i32
  }
}

module attributes {stable_mosaic.version = 11 : i64} {
  func.func @multi_encoder_kernel(%arg0: i32, %arg1: memref<1xi32, #tpu.memory_space<smem>>, %arg2: memref<8x16xf32, #tpu.memory_space<vmem>>, %arg3: memref<8x8xf32, #tpu.memory_space<vmem>>, %arg4: memref<1x16x128xf32, #tpu.memory_space<vmem>>, %arg5: memref<1x8x128xf32, #tpu.memory_space<vmem>>, %arg6: memref<1x1x128xf32, #tpu.memory_space<vmem>>, %arg7: memref<128x128xf32, #tpu.memory_space<vmem>>, %arg8: memref<1x128xf32, #tpu.memory_space<vmem>>, %arg9: memref<128x128xf32, #tpu.memory_space<vmem>>, %arg10: memref<1x128xf32, #tpu.memory_space<vmem>>, %arg11: memref<8x128xf32, #tpu.memory_space<vmem>>) attributes {dimension_semantics = [#tpu.dimension_semantics<parallel>], iteration_bounds = array<i64: 1>, scalar_prefetch = 1 : i64, scratch_operands = 0 : i64, tpu.core_type = #tpu.core_type<tc>, window_params = [{transform_indices = @transform_0, window_bounds = array<i64: 8, 16>}, {transform_indices = @transform_1, window_bounds = array<i64: 8, 8>}, {transform_indices = @transform_2, window_bounds = array<i64: 1, 16, 128>}, {transform_indices = @transform_3, window_bounds = array<i64: 1, 8, 128>}, {transform_indices = @transform_4, window_bounds = array<i64: 1, 1, 128>}, {pipeline_mode = #tpu.pipeline_mode<synchronous>, transform_indices = @transform_5, window_bounds = array<i64: 128, 128>}, {pipeline_mode = #tpu.pipeline_mode<synchronous>, transform_indices = @transform_6, window_bounds = array<i64: 1, 128>}, {pipeline_mode = #tpu.pipeline_mode<synchronous>, transform_indices = @transform_7, window_bounds = array<i64: 128, 128>}, {pipeline_mode = #tpu.pipeline_mode<synchronous>, transform_indices = @transform_8, window_bounds = array<i64: 1, 128>}, {transform_indices = @transform_9, window_bounds = array<i64: 8, 128>}]} {
    %c0 = arith.constant 0 : index
    %c0_0 = arith.constant 0 : index
    %0 = vector.load %arg2[%c0, %c0_0] : memref<8x16xf32, #tpu.memory_space<vmem>>, vector<8x16xf32>
    %c0_1 = arith.constant 0 : index
    %c0_2 = arith.constant 0 : index
    %c0_3 = arith.constant 0 : index
    %1 = vector.load %arg4[%c0_1, %c0_2, %c0_3] : memref<1x16x128xf32, #tpu.memory_space<vmem>>, vector<1x16x128xf32>
    %2 = vector.shape_cast %1 : vector<1x16x128xf32> to vector<16x128xf32>
    %cst = arith.constant dense<0.000000e+00> : vector<8x128xf32>
    %3 = tpu.matmul %0, %2, %cst {dimension_numbers = #tpu.dot_dimension_numbers<[1], [0], [0], [1], [0, 0, 1, 1], [], []>} : vector<8x16xf32>, vector<16x128xf32>, vector<8x128xf32> -> vector<8x128xf32>
    %c0_4 = arith.constant 0 : index
    %c0_5 = arith.constant 0 : index
    %4 = vector.load %arg3[%c0_4, %c0_5] : memref<8x8xf32, #tpu.memory_space<vmem>>, vector<8x8xf32>
    %c0_6 = arith.constant 0 : index
    %c0_7 = arith.constant 0 : index
    %c0_8 = arith.constant 0 : index
    %5 = vector.load %arg5[%c0_6, %c0_7, %c0_8] : memref<1x8x128xf32, #tpu.memory_space<vmem>>, vector<1x8x128xf32>
    %6 = vector.shape_cast %5 : vector<1x8x128xf32> to vector<8x128xf32>
    %cst_9 = arith.constant dense<0.000000e+00> : vector<8x128xf32>
    %7 = tpu.matmul %4, %6, %cst_9 {dimension_numbers = #tpu.dot_dimension_numbers<[1], [0], [0], [1], [0, 0, 1, 1], [], []>} : vector<8x8xf32>, vector<8x128xf32>, vector<8x128xf32> -> vector<8x128xf32>
    %8 = arith.addf %3, %7 : vector<8x128xf32>
    %c0_10 = arith.constant 0 : index
    %c0_11 = arith.constant 0 : index
    %c0_12 = arith.constant 0 : index
    %9 = vector.load %arg6[%c0_10, %c0_11, %c0_12] : memref<1x1x128xf32, #tpu.memory_space<vmem>>, vector<1x1x128xf32>
    %10 = vector.shape_cast %9 : vector<1x1x128xf32> to vector<1x128xf32>
    %11 = vector.broadcast %10 : vector<1x128xf32> to vector<8x128xf32>
    %12 = arith.addf %8, %11 : vector<8x128xf32>
    %cst_13 = arith.constant 0.000000e+00 : f32
    %13 = vector.broadcast %cst_13 : f32 to vector<8x128xf32>
    %14 = arith.maximumf %12, %13 : vector<8x128xf32>
    %c0_14 = arith.constant 0 : index
    %c0_15 = arith.constant 0 : index
    %15 = vector.load %arg7[%c0_14, %c0_15] : memref<128x128xf32, #tpu.memory_space<vmem>>, vector<128x128xf32>
    %cst_16 = arith.constant dense<0.000000e+00> : vector<8x128xf32>
    %16 = tpu.matmul %14, %15, %cst_16 {dimension_numbers = #tpu.dot_dimension_numbers<[1], [0], [0], [1], [0, 0, 1, 1], [], []>} : vector<8x128xf32>, vector<128x128xf32>, vector<8x128xf32> -> vector<8x128xf32>
    %c0_17 = arith.constant 0 : index
    %c0_18 = arith.constant 0 : index
    %17 = vector.load %arg8[%c0_17, %c0_18] : memref<1x128xf32, #tpu.memory_space<vmem>>, vector<1x128xf32>
    %18 = vector.broadcast %17 : vector<1x128xf32> to vector<8x128xf32>
    %19 = arith.addf %16, %18 : vector<8x128xf32>
    %cst_19 = arith.constant 0.000000e+00 : f32
    %20 = vector.broadcast %cst_19 : f32 to vector<8x128xf32>
    %21 = arith.maximumf %19, %20 : vector<8x128xf32>
    %c0_20 = arith.constant 0 : index
    %c0_21 = arith.constant 0 : index
    %22 = vector.load %arg9[%c0_20, %c0_21] : memref<128x128xf32, #tpu.memory_space<vmem>>, vector<128x128xf32>
    %cst_22 = arith.constant dense<0.000000e+00> : vector<8x128xf32>
    %23 = tpu.matmul %21, %22, %cst_22 {dimension_numbers = #tpu.dot_dimension_numbers<[1], [0], [0], [1], [0, 0, 1, 1], [], []>} : vector<8x128xf32>, vector<128x128xf32>, vector<8x128xf32> -> vector<8x128xf32>
    %c0_23 = arith.constant 0 : index
    %c0_24 = arith.constant 0 : index
    %24 = vector.load %arg10[%c0_23, %c0_24] : memref<1x128xf32, #tpu.memory_space<vmem>>, vector<1x128xf32>
    %25 = vector.broadcast %24 : vector<1x128xf32> to vector<8x128xf32>
    %26 = arith.addf %23, %25 : vector<8x128xf32>
    %c0_25 = arith.constant 0 : index
    %c0_26 = arith.constant 0 : index
    %27 = vector.load %arg11[%c0_25, %c0_26] : memref<8x128xf32, #tpu.memory_space<vmem>>, vector<8x128xf32>
    tpu.vector_store %arg11[%c0_25, %c0_26], %26 {strides = array<i32>} : memref<8x128xf32, #tpu.memory_space<vmem>>, vector<8x128xf32>,
    return
  }
  func.func @transform_0(%arg0: i32, %arg1: memref<1xi32, #tpu.memory_space<smem>>) -> (i32, i32) {
    %c0_i32 = arith.constant 0 : i32
    %c0_i32_0 = arith.constant 0 : i32
    return %arg0, %c0_i32 : i32, i32
  }
  func.func @transform_1(%arg0: i32, %arg1: memref<1xi32, #tpu.memory_space<smem>>) -> (i32, i32) {
    %c0_i32 = arith.constant 0 : i32
    %c0_i32_0 = arith.constant 0 : i32
    return %arg0, %c0_i32 : i32, i32
  }
  func.func @transform_2(%arg0: i32, %arg1: memref<1xi32, #tpu.memory_space<smem>>) -> (i32, i32, i32) {
    %c0 = arith.constant 0 : index
    %0 = memref.load %arg1[%c0] : memref<1xi32, #tpu.memory_space<smem>>
    %c0_i32 = arith.constant 0 : i32
    %c0_i32_0 = arith.constant 0 : i32
    %c0_i32_1 = arith.constant 0 : i32
    return %0, %c0_i32, %c0_i32_0 : i32, i32, i32
  }
  func.func @transform_3(%arg0: i32, %arg1: memref<1xi32, #tpu.memory_space<smem>>) -> (i32, i32, i32) {
    %c0 = arith.constant 0 : index
    %0 = memref.load %arg1[%c0] : memref<1xi32, #tpu.memory_space<smem>>
    %c0_i32 = arith.constant 0 : i32
    %c0_i32_0 = arith.constant 0 : i32
    %c0_i32_1 = arith.constant 0 : i32
    return %0, %c0_i32, %c0_i32_0 : i32, i32, i32
  }
  func.func @transform_4(%arg0: i32, %arg1: memref<1xi32, #tpu.memory_space<smem>>) -> (i32, i32, i32) {
    %c0 = arith.constant 0 : index
    %0 = memref.load %arg1[%c0] : memref<1xi32, #tpu.memory_space<smem>>
    %c0_i32 = arith.constant 0 : i32
    %c0_i32_0 = arith.constant 0 : i32
    %c0_i32_1 = arith.constant 0 : i32
    return %0, %c0_i32, %c0_i32_0 : i32, i32, i32
  }
  func.func @transform_5(%arg0: i32, %arg1: memref<1xi32, #tpu.memory_space<smem>>) -> (i32, i32) {
    %c0_i32 = arith.constant 0 : i32
    %c0_i32_0 = arith.constant 0 : i32
    %c0_i32_1 = arith.constant 0 : i32
    return %c0_i32, %c0_i32_0 : i32, i32
  }
  func.func @transform_6(%arg0: i32, %arg1: memref<1xi32, #tpu.memory_space<smem>>) -> (i32, i32) {
    %c0_i32 = arith.constant 0 : i32
    %c0_i32_0 = arith.constant 0 : i32
    %c0_i32_1 = arith.constant 0 : i32
    return %c0_i32, %c0_i32_0 : i32, i32
  }
  func.func @transform_7(%arg0: i32, %arg1: memref<1xi32, #tpu.memory_space<smem>>) -> (i32, i32) {
    %c0_i32 = arith.constant 0 : i32
    %c0_i32_0 = arith.constant 0 : i32
    %c0_i32_1 = arith.constant 0 : i32
    return %c0_i32, %c0_i32_0 : i32, i32
  }
  func.func @transform_8(%arg0: i32, %arg1: memref<1xi32, #tpu.memory_space<smem>>) -> (i32, i32) {
    %c0_i32 = arith.constant 0 : i32
    %c0_i32_0 = arith.constant 0 : i32
    %c0_i32_1 = arith.constant 0 : i32
    return %c0_i32, %c0_i32_0 : i32, i32
  }
  func.func @transform_9(%arg0: i32, %arg1: memref<1xi32, #tpu.memory_space<smem>>) -> (i32, i32) {
    %c0_i32 = arith.constant 0 : i32
    %c0_i32_0 = arith.constant 0 : i32
    return %arg0, %c0_i32 : i32, i32
  }
}

</mosaic_0001>

<bundles_post_ra>
// kernel: tpu_custom_call.1
= control target key start
LH: loop header
LB: loop body
LE: loop exit
PB: predicated region body
PF: predicated region fallthrough
CT: control target
= control target key end

     0   :  { %16 = vsyncpa [#allocation5], 0  ;;  %s636_s0 = inlined_call_operand.<no memory space> [shape: s32[1], index: 0, kind: input, shape index: {}]   ;;  %s637_s1 = inlined_call_operand.hbm [shape: f32[8,16], index: 1, kind: input, shape index: {}]   ;;  %s638_s2 = inlined_call_operand.hbm [shape: f32[8,8], index: 2, kind: input, shape index: {}]   ;;  %s639_s3 = inlined_call_operand.hbm [shape: f32[3,16,128], index: 3, kind: input, shape index: {}]   ;;  %s640_s4 = inlined_call_operand.hbm [shape: f32[3,8,128], index: 4, kind: input, shape index: {}]   ;;  %s641_s5 = inlined_call_operand.vmem [shape: f32[3,1,128], index: 5, kind: input, shape index: {}]   ;;  %s642_s6 = inlined_call_operand.hbm [shape: f32[128,128], index: 6, kind: input, shape index: {}]   ;;  %s643_s7 = inlined_call_operand.vmem [shape: f32[1,128], index: 7, kind: input, shape index: {}]   ;;  %s644_s8 = inlined_call_operand.hbm [shape: f32[128,128], index: 8, kind: input, shape index: {}]   ;;  %s645_s9 = inlined_call_operand.vmem [shape: f32[1,128], index: 9, kind: input, shape index: {}]   ;;  %s646_s10 = inlined_call_operand.hbm [shape: f32[8,128], index: 10, kind: output, shape index: {}]  }
   0x1   :  { %17 = vsyncpa [#allocation8], 0 }
   0x2   :  { %18 = vsyncpa [#allocation11], 0 }
   0x3   :  { %19 = vsyncpa [#allocation14], 0  ;;  %s37_s15 = sshll.u32 %s638_s2, 4  ;;  %s38_s15 = int_to_ptr.hbm [resolvable:$true] %s37_s15 }
   0x4   :  { %20 = vsyncpa [#allocation6], 0  ;;  %s510_s16 = smov [#allocation7]   ;;  %s316_s20 = sshll.u32 %s636_s0, 3 }
   0x5   :  { %s39_s17 = sshll.u32 %s510_s16, 4  ;;  %s66_s23 = scalar_lea.hbm %s640_s4, %s316_s20  ;;  %s40_s17 = int_to_ptr.vmem [resolvable:$true] %s39_s17 }
   0x6   :  { %42 = dma.hbm_to_vmem [thread:$0]  %s38_s15, 128, %s40_s17, [#allocation8]  }
   0x7   :  { %s68_s24 = sshll.u32 %s66_s23, 4  ;;  %s511_s25 = smov [#allocation10]   ;;  %s69_s24 = int_to_ptr.hbm [resolvable:$true] %s68_s24 }
   0x8   :  { %s70_s26 = sshll.u32 %s511_s25, 4  ;;  %s356_s2 = sshra.s32 %s69_s24, 4  ;;  %s71_s26 = int_to_ptr.vmem [resolvable:$true] %s70_s26  ;;  %s357_s2 = int_to_ptr.hbm [resolvable:$true] %s356_s2 }
   0x9   :  { %s358_s27 = scalar_lea.hbm %s357_s2, 8  ;;  %s360_s30 = scalar_lea.hbm %s640_s4, 24 }
   0xa   :  { %p359_p0 = scmp.ne.s32.totalorder %s357_s2, %s358_s27  ;;  %p361_p1 = scmp.lt.s32.totalorder %s357_s2, %s640_s4 }
   0xb   :  { %p362_p2 = scmp.lt.s32.totalorder %s360_s30, %s358_s27 }
   0xd   :  { %p363_p3 = por %p362_p2, %p361_p1 }
   0xf   :  { %p364_p4 = pnand %p363_p3, %p359_p0 }
  0x11   :  { %367 = shalt.err (!%p364_p4)
}
  0x12   :  { %73 = dma.hbm_to_vmem [thread:$0]  %s69_s24, 128, %s71_s26, [#allocation11]  }
  0x13   :  { %s26_s15 = sshll.u32 %s637_s1, 4  ;;  %s512_s16 = smov [#allocation4]   ;;  %s27_s15 = int_to_ptr.hbm [resolvable:$true] %s26_s15 }
  0x14   :  { %s28_s17 = sshll.u32 %s512_s16, 4  ;;  %s319_s20 = sshll.u32 %s636_s0, 4  ;;  %s29_s17 = int_to_ptr.vmem [resolvable:$true] %s28_s17 }
  0x15   :  { %31 = dma.hbm_to_vmem [thread:$0]  %s27_s15, 128, %s29_s17, [#allocation5]  }
  0x16   :  { %s50_s22 = scalar_lea.hbm %s639_s3, %s319_s20  ;;  %s513_s25 = smov [#allocation9]  }
  0x17   :  { %s51_s23 = sshll.u32 %s50_s22, 4  ;;  %s53_s24 = sshll.u32 %s513_s25, 4  ;;  %s52_s23 = int_to_ptr.hbm [resolvable:$true] %s51_s23  ;;  %s54_s24 = int_to_ptr.vmem [resolvable:$true] %s53_s24 }
  0x18   :  { %s404_s26 = sshra.s32 %s52_s23, 4  ;;  %s408_s28 = scalar_lea.hbm %s639_s3, 48  ;;  %s405_s26 = int_to_ptr.hbm [resolvable:$true] %s404_s26 }
  0x19   :  { %s406_s1 = scalar_lea.hbm %s405_s26, 16  ;;  %p409_p6 = scmp.lt.s32.totalorder %s405_s26, %s639_s3 }
  0x1a   :  { %p407_p5 = scmp.ne.s32.totalorder %s405_s26, %s406_s1  ;;  %p410_p7 = scmp.lt.s32.totalorder %s408_s28, %s406_s1 }
  0x1c   :  { %p411_p8 = por %p410_p7, %p409_p6 }
  0x1e   :  { %p412_p9 = pnand %p411_p8, %p407_p5 }
  0x20   :  { %415 = shalt.err (!%p412_p9)
}
  0x21   :  { %s514_s11 = smov 128   ;;  %s515_s12 = smov 8  }
  0x22   :  { %59 = dma.hbm_to_vmem [thread:$0]  %s52_s23, 256, %s54_s24, [#allocation8], %s514_s11, %s514_s11, %s515_s12  }
  0x23   :  { %s85_s15 = sshll.u32 %s642_s6, 4  ;;  %s516_s16 = smov [#allocation12]   ;;  %s86_s15 = int_to_ptr.hbm [resolvable:$true] %s85_s15 }
  0x24   :  { %s87_s17 = sshll.u32 %s516_s16, 4  ;;  %s100_s20 = sshll.u32 %s644_s8, 4  ;;  %s88_s17 = int_to_ptr.vmem [resolvable:$true] %s87_s17  ;;  %s101_s20 = int_to_ptr.hbm [resolvable:$true] %s100_s20 }
  0x25   :  { %93 = dma.hbm_to_vmem [thread:$0]  %s86_s15, 2048, %s88_s17, [#allocation11], %s514_s11, %s514_s11, %s515_s12  }
  0x26   :  { %s517_s3 = smov [#allocation13]  }
  0x27   :  { %s102_s21 = sshll.u32 %s517_s3, 4  ;;  %s103_s21 = int_to_ptr.vmem [resolvable:$true] %s102_s21 }
  0x28   :  { %108 = dma.hbm_to_vmem [thread:$0]  %s101_s20, 2048, %s103_s21, [#allocation14], %s514_s11, %s514_s11, %s515_s12  }
  0x29   :  { %500 = dma.done.wait [#allocation5], 128  }
  0x2a   :  { %501 = vsyncadd [#allocation5], 4294967168 }
  0x2b   :  { %502 = dma.done.wait [#allocation8], 384  }
  0x2c   :  { %503 = vsyncadd [#allocation8], 4294966912 }
  0x2d   :  { %504 = dma.done.wait [#allocation11], 2176  }
  0x2e   :  { %505 = vsyncadd [#allocation11], 4294965120 }
  0x2f   :  { %506 = dma.done.wait [#allocation14], 2048  }
  0x30   :  { %507 = vsyncadd [#allocation14], 4294965248  ;;  %p142_p10 = scmp.lt.s32.totalorder %s636_s0, 2  ;;  %vm151_vm0 = vcmask 64512   ;;  %v148_v0 = vld [vmem:[#allocation9 + $0x8] sm:$0xff]  ;;  %v150_v1 = vld [vmem:[#allocation10] sm:$0xff] }
  0x31   :  { %v147_v2 = vld [vmem:[#allocation9] sm:$0xff]  ;;  %193 = vmatpush.msra.mxu1 %v148_v0  ;;  %170 = vmatpush.msra.mxu0 %v150_v1  ;;  %v149_v3 = vld [vmem:[#allocation7] sm:$0xff]  ;;  %v146_v4 = vld [vmem:[#allocation4] sm:$0xff]  ;;  %vm175_vm1 = vcmask 130048   ;;  %s518_s28 = smov [#allocation15]   ;;  %s294_s12 = sshll.u32 %s646_s10, 4  ;;  %s295_s12 = int_to_ptr.hbm [resolvable:$true] %s294_s12 }
  0x32   :  { %s648_s0 = smov (!%p142_p10, %s636_s0), 2  ;;  %v220_v5 = vld [vmem:[#allocation12 + $0x78] sm:$0xff]  ;;  %317 = vmatmul.msk.f32.vlgmr.msra.gmra.mxu0 %vm151_vm0, %v149_v3  ;;  %v219_v6 = vld [vmem:[#allocation12 + $0x70] sm:$0xff]  ;;  %v218_v7 = vld [vmem:[#allocation12 + $0x68] sm:$0xff]  ;;  %s292_s29 = sshll.u32 %s518_s28, 4  ;;  %s293_s29 = int_to_ptr.vmem [resolvable:$true] %s292_s29 }
  0x33   :  { %225 = vmatpush.msra.mxu2 %v220_v5  ;;  %194 = vmatpush.msra.mxu1 %v147_v2  ;;  %s144_s24 = scalar_lea.vmem %s641_s5, %s648_s0  ;;  %v217_v8 = vld [vmem:[#allocation12 + $0x60] sm:$0xff]  ;;  %v216_v9 = vld [vmem:[#allocation12 + $0x58] sm:$0xff]  ;;  %v215_v10 = vld [vmem:[#allocation12 + $0x50] sm:$0xff] }
  0x34   :  { %318 = vmatmul.msk.f32.vlgmr.msra.gmra.mxu1 %vm175_vm1, %v146_v4  ;;  %v214_v11 = vld [vmem:[#allocation12 + $0x48] sm:$0xff]  ;;  %v213_v12 = vld [vmem:[#allocation12 + $0x40] sm:$0xff]  ;;  %v212_v13 = vld [vmem:[#allocation12 + $0x38] sm:$0xff] }
  0x35   :  { %226 = vmatpush.msra.mxu2 %v219_v6  ;;  %v211_v14 = vld [vmem:[#allocation12 + $0x30] sm:$0xff]  ;;  %v210_v15 = vld [vmem:[#allocation12 + $0x28] sm:$0xff]  ;;  %v209_v16 = vld [vmem:[#allocation12 + $0x20] sm:$0xff] }
  0x36   :  { %v208_v17 = vld [vmem:[#allocation12 + $0x18] sm:$0xff]  ;;  %v207_v18 = vld [vmem:[#allocation12 + $0x10] sm:$0xff]  ;;  %v206_v19 = vld [vmem:[#allocation12 + $0x8] sm:$0xff] }
  0x37   :  { %227 = vmatpush.msra.mxu2 %v218_v7  ;;  %v205_v20 = vld [vmem:[#allocation12] sm:$0xff]  ;;  %v261_v21 = vld [vmem:[#allocation13 + $0x78] sm:$0xff]  ;;  %v260_v22 = vld [vmem:[#allocation13 + $0x70] sm:$0xff] }
  0x38   :  { %266 = vmatpush.msra.mxu3 %v261_v21  ;;  %v259_v23 = vld [vmem:[#allocation13 + $0x68] sm:$0xff]  ;;  %v258_v24 = vld [vmem:[#allocation13 + $0x60] sm:$0xff]  ;;  %v257_v25 = vld [vmem:[#allocation13 + $0x58] sm:$0xff] }
  0x39   :  { %228 = vmatpush.msra.mxu2 %v217_v8  ;;  %v256_v26 = vld [vmem:[#allocation13 + $0x50] sm:$0xff]  ;;  %v255_v27 = vld [vmem:[#allocation13 + $0x48] sm:$0xff]  ;;  %v254_v28 = vld [vmem:[#allocation13 + $0x40] sm:$0xff] }
  0x3a   :  { %267 = vmatpush.msra.mxu3 %v260_v22  ;;  %v253_v29 = vld [vmem:[#allocation13 + $0x38] sm:$0xff]  ;;  %v252_v30 = vld [vmem:[#allocation13 + $0x30] sm:$0xff]  ;;  %v251_v31 = vld [vmem:[#allocation13 + $0x28] sm:$0xff] }
  0x3b   :  { %229 = vmatpush.msra.mxu2 %v216_v9  ;;  %v250_v32 = vld [vmem:[#allocation13 + $0x20] sm:$0xff]  ;;  %v249_v33 = vld [vmem:[#allocation13 + $0x18] sm:$0xff]  ;;  %v248_v40 = vld [vmem:[#allocation13 + $0x10] sm:$0xff] }
  0x3c   :  { %268 = vmatpush.msra.mxu3 %v259_v23  ;;  %v329_v35 = vld [vmem:[%s144_s24] ss:$0 sm:$0xff]  ;;  %v247_v41 = vld [vmem:[#allocation13 + $0x8] sm:$0xff]  ;;  %v246_v42 = vld [vmem:[#allocation13] sm:$0xff] }
  0x3d   :  { %230 = vmatpush.msra.mxu2 %v215_v10  ;;  %v330_v43 = vld [vmem:[%s643_s7] ss:$0 sm:$0xff] }
  0x3e   :  { %269 = vmatpush.msra.mxu3 %v258_v24  ;;  %v331_v47 = vld [vmem:[%s645_s9] ss:$0 sm:$0xff] }
  0x3f   :  { %231 = vmatpush.msra.mxu2 %v214_v11 }
  0x40   :  { %270 = vmatpush.msra.mxu3 %v257_v25 }
  0x41   :  { %232 = vmatpush.msra.mxu2 %v213_v12 }
  0x42   :  { %271 = vmatpush.msra.mxu3 %v256_v26 }
  0x43   :  { %233 = vmatpush.msra.mxu2 %v212_v13 }
  0x44   :  { %272 = vmatpush.msra.mxu3 %v255_v27 }
  0x45   :  { %234 = vmatpush.msra.mxu2 %v211_v14 }
  0x46   :  { %273 = vmatpush.msra.mxu3 %v254_v28 }
  0x47   :  { %235 = vmatpush.msra.mxu2 %v210_v15 }
  0x48   :  { %274 = vmatpush.msra.mxu3 %v253_v29 }
  0x49   :  { %236 = vmatpush.msra.mxu2 %v209_v16 }
  0x4a   :  { %275 = vmatpush.msra.mxu3 %v252_v30 }
  0x4b   :  { %237 = vmatpush.msra.mxu2 %v208_v17 }
  0x4c   :  { %276 = vmatpush.msra.mxu3 %v251_v31 }
  0x4d   :  { %238 = vmatpush.msra.mxu2 %v207_v18 }
  0x4e   :  { %277 = vmatpush.msra.mxu3 %v250_v32 }
  0x4f   :  { %239 = vmatpush.msra.mxu2 %v206_v19 }
  0x50   :  { %278 = vmatpush.msra.mxu3 %v249_v33 }
  0x51   :  { %240 = vmatpush.msra.mxu2 %v205_v20 }
  0x52   :  { %279 = vmatpush.msra.mxu3 %v248_v40 }
  0x54   :  { %280 = vmatpush.msra.mxu3 %v247_v41 }
  0x56   :  { %281 = vmatpush.msra.mxu3 %v246_v42 }
  0xaf   :  { %v172_v34 = vpop.f32.mrf.mxu0 }
  0xb1   :  { %v196_v36 = vpop.f32.mrf.mxu1 }
  0xb2   :  { %v197_v37 = vadd.f32 %v196_v36, %v172_v34 }
  0xb4   :  { %v203_v38 = vadd.f32 %v329_v35, %v197_v37 }
  0xb6   :  { %v204_v39 = vmax.f32 %v203_v38, 0.0 }
  0xb8   :  { %241 = vmatmul.f32.vlgmr.msra.gmra.mxu2 %v204_v39 }
 0x13b   :  { %v242_v44 = vpop.f32.mrf.mxu2 }
 0x13c   :  { %v243_v45 = vadd.f32 %v330_v43, %v242_v44 }
 0x13e   :  { %v245_v46 = vmax.f32 %v243_v45, 0.0 }
 0x140   :  { %282 = vmatmul.f32.vlgmr.msra.gmra.mxu3 %v245_v46 }
 0x1c3   :  { %v283_v48 = vpop.f32.mrf.mxu3 }
 0x1c4   :  { %v284_v49 = vadd.f32 %v331_v47, %v283_v48 }
 0x1c6   :  { %286 = vst [vmem:[#allocation15] sm:$0xff] %v284_v49 }
 0x1c7   :  { %297 = dma.vmem_to_hbm [thread:$0]  %s293_s29, 128, %s295_s12, [#allocation6]  }
 0x1c8   :  { %508 = dma.done.wait [#allocation6], 128  }
 0x1c9   :  { %509 = vsyncadd [#allocation6], 4294967168 }
 0x1ca   :  { %302 = vsyncpa [#allocation5], 1 }
 0x1cb   :  { %303 = vsyncpa [#allocation8], 1 }
 0x1cc   :  { %304 = vsyncpa [#allocation11], 1 }
 0x1cd   :  { %305 = vsyncpa [#allocation14], 1 }
 0x1ce   :  { %306 = vsyncpa [#allocation6], 1 }

// kernel: tpu_custom_call.1
= control target key start
LH: loop header
LB: loop body
LE: loop exit
PB: predicated region body
PF: predicated region fallthrough
CT: control target
= control target key end

     0   :  { %16 = vsyncpa [#allocation5], 0  ;;  %s636_s0 = inlined_call_operand.<no memory space> [shape: s32[1], index: 0, kind: input, shape index: {}]   ;;  %s637_s1 = inlined_call_operand.hbm [shape: f32[8,16], index: 1, kind: input, shape index: {}]   ;;  %s638_s2 = inlined_call_operand.hbm [shape: f32[8,8], index: 2, kind: input, shape index: {}]   ;;  %s639_s3 = inlined_call_operand.hbm [shape: f32[3,16,128], index: 3, kind: input, shape index: {}]   ;;  %s640_s4 = inlined_call_operand.hbm [shape: f32[3,8,128], index: 4, kind: input, shape index: {}]   ;;  %s641_s5 = inlined_call_operand.vmem [shape: f32[3,1,128], index: 5, kind: input, shape index: {}]   ;;  %s642_s6 = inlined_call_operand.hbm [shape: f32[128,128], index: 6, kind: input, shape index: {}]   ;;  %s643_s7 = inlined_call_operand.vmem [shape: f32[1,128], index: 7, kind: input, shape index: {}]   ;;  %s644_s8 = inlined_call_operand.hbm [shape: f32[128,128], index: 8, kind: input, shape index: {}]   ;;  %s645_s9 = inlined_call_operand.vmem [shape: f32[1,128], index: 9, kind: input, shape index: {}]   ;;  %s646_s10 = inlined_call_operand.hbm [shape: f32[8,128], index: 10, kind: output, shape index: {}]  }
   0x1   :  { %17 = vsyncpa [#allocation8], 0 }
   0x2   :  { %18 = vsyncpa [#allocation11], 0 }
   0x3   :  { %19 = vsyncpa [#allocation14], 0  ;;  %s37_s15 = sshll.u32 %s638_s2, 4  ;;  %s38_s15 = int_to_ptr.hbm [resolvable:$true] %s37_s15 }
   0x4   :  { %20 = vsyncpa [#allocation6], 0  ;;  %s510_s16 = smov [#allocation7]   ;;  %s316_s20 = sshll.u32 %s636_s0, 3 }
   0x5   :  { %s39_s17 = sshll.u32 %s510_s16, 4  ;;  %s66_s23 = scalar_lea.hbm %s640_s4, %s316_s20  ;;  %s40_s17 = int_to_ptr.vmem [resolvable:$true] %s39_s17 }
   0x6   :  { %42 = dma.hbm_to_vmem [thread:$0]  %s38_s15, 128, %s40_s17, [#allocation8]  }
   0x7   :  { %s68_s24 = sshll.u32 %s66_s23, 4  ;;  %s511_s25 = smov [#allocation10]   ;;  %s69_s24 = int_to_ptr.hbm [resolvable:$true] %s68_s24 }
   0x8   :  { %s70_s26 = sshll.u32 %s511_s25, 4  ;;  %s356_s2 = sshra.s32 %s69_s24, 4  ;;  %s71_s26 = int_to_ptr.vmem [resolvable:$true] %s70_s26  ;;  %s357_s2 = int_to_ptr.hbm [resolvable:$true] %s356_s2 }
   0x9   :  { %s358_s27 = scalar_lea.hbm %s357_s2, 8  ;;  %s360_s30 = scalar_lea.hbm %s640_s4, 24 }
   0xa   :  { %p359_p0 = scmp.ne.s32.totalorder %s357_s2, %s358_s27  ;;  %p361_p1 = scmp.lt.s32.totalorder %s357_s2, %s640_s4 }
   0xb   :  { %p362_p2 = scmp.lt.s32.totalorder %s360_s30, %s358_s27 }
   0xd   :  { %p363_p3 = por %p362_p2, %p361_p1 }
   0xf   :  { %p364_p4 = pnand %p363_p3, %p359_p0 }
  0x11   :  { %367 = shalt.err (!%p364_p4)
}
  0x12   :  { %73 = dma.hbm_to_vmem [thread:$0]  %s69_s24, 128, %s71_s26, [#allocation11]  }
  0x13   :  { %s26_s15 = sshll.u32 %s637_s1, 4  ;;  %s512_s16 = smov [#allocation4]   ;;  %s27_s15 = int_to_ptr.hbm [resolvable:$true] %s26_s15 }
  0x14   :  { %s28_s17 = sshll.u32 %s512_s16, 4  ;;  %s319_s20 = sshll.u32 %s636_s0, 4  ;;  %s29_s17 = int_to_ptr.vmem [resolvable:$true] %s28_s17 }
  0x15   :  { %31 = dma.hbm_to_vmem [thread:$0]  %s27_s15, 128, %s29_s17, [#allocation5]  }
  0x16   :  { %s50_s22 = scalar_lea.hbm %s639_s3, %s319_s20  ;;  %s513_s25 = smov [#allocation9]  }
  0x17   :  { %s51_s23 = sshll.u32 %s50_s22, 4  ;;  %s53_s24 = sshll.u32 %s513_s25, 4  ;;  %s52_s23 = int_to_ptr.hbm [resolvable:$true] %s51_s23  ;;  %s54_s24 = int_to_ptr.vmem [resolvable:$true] %s53_s24 }
  0x18   :  { %s404_s26 = sshra.s32 %s52_s23, 4  ;;  %s408_s28 = scalar_lea.hbm %s639_s3, 48  ;;  %s405_s26 = int_to_ptr.hbm [resolvable:$true] %s404_s26 }
  0x19   :  { %s406_s1 = scalar_lea.hbm %s405_s26, 16  ;;  %p409_p6 = scmp.lt.s32.totalorder %s405_s26, %s639_s3 }
  0x1a   :  { %p407_p5 = scmp.ne.s32.totalorder %s405_s26, %s406_s1  ;;  %p410_p7 = scmp.lt.s32.totalorder %s408_s28, %s406_s1 }
  0x1c   :  { %p411_p8 = por %p410_p7, %p409_p6 }
  0x1e   :  { %p412_p9 = pnand %p411_p8, %p407_p5 }
  0x20   :  { %415 = shalt.err (!%p412_p9)
}
  0x21   :  { %s514_s11 = smov 128   ;;  %s515_s12 = smov 8  }
  0x22   :  { %59 = dma.hbm_to_vmem [thread:$0]  %s52_s23, 256, %s54_s24, [#allocation8], %s514_s11, %s514_s11, %s515_s12  }
  0x23   :  { %s85_s15 = sshll.u32 %s642_s6, 4  ;;  %s516_s16 = smov [#allocation12]   ;;  %s86_s15 = int_to_ptr.hbm [resolvable:$true] %s85_s15 }
  0x24   :  { %s87_s17 = sshll.u32 %s516_s16, 4  ;;  %s100_s20 = sshll.u32 %s644_s8, 4  ;;  %s88_s17 = int_to_ptr.vmem [resolvable:$true] %s87_s17  ;;  %s101_s20 = int_to_ptr.hbm [resolvable:$true] %s100_s20 }
  0x25   :  { %93 = dma.hbm_to_vmem [thread:$0]  %s86_s15, 2048, %s88_s17, [#allocation11], %s514_s11, %s514_s11, %s515_s12  }
  0x26   :  { %s517_s3 = smov [#allocation13]  }
  0x27   :  { %s102_s21 = sshll.u32 %s517_s3, 4  ;;  %s103_s21 = int_to_ptr.vmem [resolvable:$true] %s102_s21 }
  0x28   :  { %108 = dma.hbm_to_vmem [thread:$0]  %s101_s20, 2048, %s103_s21, [#allocation14], %s514_s11, %s514_s11, %s515_s12  }
  0x29   :  { %500 = dma.done.wait [#allocation5], 128  }
  0x2a   :  { %501 = vsyncadd [#allocation5], 4294967168 }
  0x2b   :  { %502 = dma.done.wait [#allocation8], 384  }
  0x2c   :  { %503 = vsyncadd [#allocation8], 4294966912 }
  0x2d   :  { %504 = dma.done.wait [#allocation11], 2176  }
  0x2e   :  { %505 = vsyncadd [#allocation11], 4294965120 }
  0x2f   :  { %506 = dma.done.wait [#allocation14], 2048  }
  0x30   :  { %507 = vsyncadd [#allocation14], 4294965248  ;;  %p142_p10 = scmp.lt.s32.totalorder %s636_s0, 2  ;;  %vm151_vm0 = vcmask 64512   ;;  %v148_v0 = vld [vmem:[#allocation9 + $0x8] sm:$0xff]  ;;  %v150_v1 = vld [vmem:[#allocation10] sm:$0xff] }
  0x31   :  { %v147_v2 = vld [vmem:[#allocation9] sm:$0xff]  ;;  %193 = vmatpush.msra.mxu1 %v148_v0  ;;  %170 = vmatpush.msra.mxu0 %v150_v1  ;;  %v149_v3 = vld [vmem:[#allocation7] sm:$0xff]  ;;  %v146_v4 = vld [vmem:[#allocation4] sm:$0xff]  ;;  %vm175_vm1 = vcmask 130048   ;;  %s518_s28 = smov [#allocation15]   ;;  %s294_s12 = sshll.u32 %s646_s10, 4  ;;  %s295_s12 = int_to_ptr.hbm [resolvable:$true] %s294_s12 }
  0x32   :  { %s648_s0 = smov (!%p142_p10, %s636_s0), 2  ;;  %v220_v5 = vld [vmem:[#allocation12 + $0x78] sm:$0xff]  ;;  %317 = vmatmul.msk.f32.vlgmr.msra.gmra.mxu0 %vm151_vm0, %v149_v3  ;;  %v219_v6 = vld [vmem:[#allocation12 + $0x70] sm:$0xff]  ;;  %v218_v7 = vld [vmem:[#allocation12 + $0x68] sm:$0xff]  ;;  %s292_s29 = sshll.u32 %s518_s28, 4  ;;  %s293_s29 = int_to_ptr.vmem [resolvable:$true] %s292_s29 }
  0x33   :  { %225 = vmatpush.msra.mxu2 %v220_v5  ;;  %194 = vmatpush.msra.mxu1 %v147_v2  ;;  %s144_s24 = scalar_lea.vmem %s641_s5, %s648_s0  ;;  %v217_v8 = vld [vmem:[#allocation12 + $0x60] sm:$0xff]  ;;  %v216_v9 = vld [vmem:[#allocation12 + $0x58] sm:$0xff]  ;;  %v215_v10 = vld [vmem:[#allocation12 + $0x50] sm:$0xff] }
  0x34   :  { %318 = vmatmul.msk.f32.vlgmr.msra.gmra.mxu1 %vm175_vm1, %v146_v4  ;;  %v214_v11 = vld [vmem:[#allocation12 + $0x48] sm:$0xff]  ;;  %v213_v12 = vld [vmem:[#allocation12 + $0x40] sm:$0xff]  ;;  %v212_v13 = vld [vmem:[#allocation12 + $0x38] sm:$0xff] }
  0x35   :  { %226 = vmatpush.msra.mxu2 %v219_v6  ;;  %v211_v14 = vld [vmem:[#allocation12 + $0x30] sm:$0xff]  ;;  %v210_v15 = vld [vmem:[#allocation12 + $0x28] sm:$0xff]  ;;  %v209_v16 = vld [vmem:[#allocation12 + $0x20] sm:$0xff] }
  0x36   :  { %v208_v17 = vld [vmem:[#allocation12 + $0x18] sm:$0xff]  ;;  %v207_v18 = vld [vmem:[#allocation12 + $0x10] sm:$0xff]  ;;  %v206_v19 = vld [vmem:[#allocation12 + $0x8] sm:$0xff] }
  0x37   :  { %227 = vmatpush.msra.mxu2 %v218_v7  ;;  %v205_v20 = vld [vmem:[#allocation12] sm:$0xff]  ;;  %v261_v21 = vld [vmem:[#allocation13 + $0x78] sm:$0xff]  ;;  %v260_v22 = vld [vmem:[#allocation13 + $0x70] sm:$0xff] }
  0x38   :  { %266 = vmatpush.msra.mxu3 %v261_v21  ;;  %v259_v23 = vld [vmem:[#allocation13 + $0x68] sm:$0xff]  ;;  %v258_v24 = vld [vmem:[#allocation13 + $0x60] sm:$0xff]  ;;  %v257_v25 = vld [vmem:[#allocation13 + $0x58] sm:$0xff] }
  0x39   :  { %228 = vmatpush.msra.mxu2 %v217_v8  ;;  %v256_v26 = vld [vmem:[#allocation13 + $0x50] sm:$0xff]  ;;  %v255_v27 = vld [vmem:[#allocation13 + $0x48] sm:$0xff]  ;;  %v254_v28 = vld [vmem:[#allocation13 + $0x40] sm:$0xff] }
  0x3a   :  { %267 = vmatpush.msra.mxu3 %v260_v22  ;;  %v253_v29 = vld [vmem:[#allocation13 + $0x38] sm:$0xff]  ;;  %v252_v30 = vld [vmem:[#allocation13 + $0x30] sm:$0xff]  ;;  %v251_v31 = vld [vmem:[#allocation13 + $0x28] sm:$0xff] }
  0x3b   :  { %229 = vmatpush.msra.mxu2 %v216_v9  ;;  %v250_v32 = vld [vmem:[#allocation13 + $0x20] sm:$0xff]  ;;  %v249_v33 = vld [vmem:[#allocation13 + $0x18] sm:$0xff]  ;;  %v248_v40 = vld [vmem:[#allocation13 + $0x10] sm:$0xff] }
  0x3c   :  { %268 = vmatpush.msra.mxu3 %v259_v23  ;;  %v329_v35 = vld [vmem:[%s144_s24] ss:$0 sm:$0xff]  ;;  %v247_v41 = vld [vmem:[#allocation13 + $0x8] sm:$0xff]  ;;  %v246_v42 = vld [vmem:[#allocation13] sm:$0xff] }
  0x3d   :  { %230 = vmatpush.msra.mxu2 %v215_v10  ;;  %v330_v43 = vld [vmem:[%s643_s7] ss:$0 sm:$0xff] }
  0x3e   :  { %269 = vmatpush.msra.mxu3 %v258_v24  ;;  %v331_v47 = vld [vmem:[%s645_s9] ss:$0 sm:$0xff] }
  0x3f   :  { %231 = vmatpush.msra.mxu2 %v214_v11 }
  0x40   :  { %270 = vmatpush.msra.mxu3 %v257_v25 }
  0x41   :  { %232 = vmatpush.msra.mxu2 %v213_v12 }
  0x42   :  { %271 = vmatpush.msra.mxu3 %v256_v26 }
  0x43   :  { %233 = vmatpush.msra.mxu2 %v212_v13 }
  0x44   :  { %272 = vmatpush.msra.mxu3 %v255_v27 }
  0x45   :  { %234 = vmatpush.msra.mxu2 %v211_v14 }
  0x46   :  { %273 = vmatpush.msra.mxu3 %v254_v28 }
  0x47   :  { %235 = vmatpush.msra.mxu2 %v210_v15 }
  0x48   :  { %274 = vmatpush.msra.mxu3 %v253_v29 }
  0x49   :  { %236 = vmatpush.msra.mxu2 %v209_v16 }
  0x4a   :  { %275 = vmatpush.msra.mxu3 %v252_v30 }
  0x4b   :  { %237 = vmatpush.msra.mxu2 %v208_v17 }
  0x4c   :  { %276 = vmatpush.msra.mxu3 %v251_v31 }
  0x4d   :  { %238 = vmatpush.msra.mxu2 %v207_v18 }
  0x4e   :  { %277 = vmatpush.msra.mxu3 %v250_v32 }
  0x4f   :  { %239 = vmatpush.msra.mxu2 %v206_v19 }
  0x50   :  { %278 = vmatpush.msra.mxu3 %v249_v33 }
  0x51   :  { %240 = vmatpush.msra.mxu2 %v205_v20 }
  0x52   :  { %279 = vmatpush.msra.mxu3 %v248_v40 }
  0x54   :  { %280 = vmatpush.msra.mxu3 %v247_v41 }
  0x56   :  { %281 = vmatpush.msra.mxu3 %v246_v42 }
  0xaf   :  { %v172_v34 = vpop.f32.mrf.mxu0 }
  0xb1   :  { %v196_v36 = vpop.f32.mrf.mxu1 }
  0xb2   :  { %v197_v37 = vadd.f32 %v196_v36, %v172_v34 }
  0xb4   :  { %v203_v38 = vadd.f32 %v329_v35, %v197_v37 }
  0xb6   :  { %v204_v39 = vmax.f32 %v203_v38, 0.0 }
  0xb8   :  { %241 = vmatmul.f32.vlgmr.msra.gmra.mxu2 %v204_v39 }
 0x13b   :  { %v242_v44 = vpop.f32.mrf.mxu2 }
 0x13c   :  { %v243_v45 = vadd.f32 %v330_v43, %v242_v44 }
 0x13e   :  { %v245_v46 = vmax.f32 %v243_v45, 0.0 }
 0x140   :  { %282 = vmatmul.f32.vlgmr.msra.gmra.mxu3 %v245_v46 }
 0x1c3   :  { %v283_v48 = vpop.f32.mrf.mxu3 }
 0x1c4   :  { %v284_v49 = vadd.f32 %v331_v47, %v283_v48 }
 0x1c6   :  { %286 = vst [vmem:[#allocation15] sm:$0xff] %v284_v49 }
 0x1c7   :  { %297 = dma.vmem_to_hbm [thread:$0]  %s293_s29, 128, %s295_s12, [#allocation6]  }
 0x1c8   :  { %508 = dma.done.wait [#allocation6], 128  }
 0x1c9   :  { %509 = vsyncadd [#allocation6], 4294967168 }
 0x1ca   :  { %302 = vsyncpa [#allocation5], 1 }
 0x1cb   :  { %303 = vsyncpa [#allocation8], 1 }
 0x1cc   :  { %304 = vsyncpa [#allocation11], 1 }
 0x1cd   :  { %305 = vsyncpa [#allocation14], 1 }
 0x1ce   :  { %306 = vsyncpa [#allocation6], 1 }

</bundles_post_ra>
